<compile_context>
chip_gen: v7x
topology: tpu7x:2x2x1
jax: 0.10.0
libtpu: 0.0.40
codegen_flags: <defaults>
</compile_context>

<pallas_src>
import functools

import jax
import jax.numpy as jnp
from jax.experimental import pallas as pl
from jax.experimental.pallas import tpu as pltpu


# ---------------------------------------------------------------------------
# Pass 1 (only for norm=True): global sum(|pred|) and sum(|gt|).
# ---------------------------------------------------------------------------
def _abs_sum_kernel(pred_ref, gt_ref, sp_ref, sg_ref, *, batch, tile_b):
    i = pl.program_id(0)

    @pl.when(i == 0)
    def _():
        sp_ref[...] = jnp.zeros_like(sp_ref)
        sg_ref[...] = jnp.zeros_like(sg_ref)

    row_ids = i * tile_b + jax.lax.broadcasted_iota(jnp.int32, (tile_b, 1), 0)
    in_bounds = row_ids < batch                                    # (tile_b, 1)

    p = jnp.where(in_bounds, jnp.abs(pred_ref[...].astype(jnp.float32)), 0.0)
    g = jnp.where(in_bounds, jnp.abs(gt_ref[...].astype(jnp.float32)), 0.0)
    sp_ref[...] += jnp.sum(p)
    sg_ref[...] += jnp.sum(g)


def _global_abs_sums(pred, gt, *, batch, d, tile_b, grid):
    kernel = functools.partial(_abs_sum_kernel, batch=batch, tile_b=tile_b)
    return pl.pallas_call(
        kernel,
        out_shape=(jax.ShapeDtypeStruct((1, 1), jnp.float32),
                   jax.ShapeDtypeStruct((1, 1), jnp.float32)),
        grid_spec=pltpu.PrefetchScalarGridSpec(
            num_scalar_prefetch=0,
            grid=grid,
            in_specs=[pl.BlockSpec((tile_b, d), lambda i: (i, 0)),
                      pl.BlockSpec((tile_b, d), lambda i: (i, 0))],
            out_specs=[pl.BlockSpec((1, 1), lambda i: (0, 0)),
                       pl.BlockSpec((1, 1), lambda i: (0, 0))]),
        compiler_params=pltpu.CompilerParams(
            dimension_semantics=("arbitrary",)),
    )(pred, gt)


# ---------------------------------------------------------------------------
# Main kernel: weighted L1 with optional normalization and size-averaging.
# ---------------------------------------------------------------------------
def _l1_joint_loss_kernel(pred_ref, gt_ref, w_ref, *rest,
                          batch, tile_b, size_average, norm):
    if norm:
        sp_ref, sg_ref, out_ref, tot_ref, val_ref = rest
    else:
        out_ref, tot_ref, val_ref = rest

    i = pl.program_id(0)

    @pl.when(i == 0)
    def _():
        tot_ref[...] = jnp.zeros_like(tot_ref)
        val_ref[...] = jnp.zeros_like(val_ref)

    pred = pred_ref[...].astype(jnp.float32)
    gt = gt_ref[...].astype(jnp.float32)
    w = w_ref[...].astype(jnp.float32)

    if norm:
        # torch.norm(x, 1) == sum(|x|) over the whole tensor (precomputed in
        # pass 1).  approx reciprocal uses the otherwise-idle EUP slot.
        pred = pred * pl.reciprocal(sp_ref[...], approx=True)
        gt = gt * pl.reciprocal(sg_ref[...], approx=True)

    # Mask rows beyond the true batch size (ragged last tile).
    row_ids = i * tile_b + jax.lax.broadcasted_iota(jnp.int32, (tile_b, 1), 0)
    in_bounds = row_ids < batch                                    # (tile_b, 1)

    out = jnp.abs(pred - gt) * w
    out = jnp.where(in_bounds, out, 0.0)
    tot_ref[...] += jnp.sum(out)

    if size_average:
        # weights.byte().any(dim=1): a row counts as valid if any weight has
        # magnitude >= 1 (exact for 0/1 visibility masks).
        row_any = jnp.any(jnp.abs(w) >= 1.0, axis=1, keepdims=True)  # (tile_b,1)
        row_any = jnp.logical_and(row_any, in_bounds)
        val_ref[...] += jnp.sum(row_any.astype(jnp.float32))

    @pl.when(i == pl.num_programs(0) - 1)
    def _():
        if size_average:
            out_ref[...] = tot_ref[...] / val_ref[...]
        else:
            out_ref[...] = tot_ref[...]


def l1_joint_regression_loss(preds, gt_joints, gt_joints_vis, *,
                             num_joints: int,
                             size_average: bool = True,
                             reduce: bool = True,
                             norm: bool = False,
                             tile_b: int = 1024):
    """Pallas implementation of L1JointRegressionLoss_eth_code.forward."""
    del reduce  # stored but never used by the PyTorch module
    batch = preds.shape[0]
    d = num_joints * 3
    # Metadata-only reshape; keep the caller's dtype (kernel casts on load).
    pred_jts = preds.reshape((batch, d))

    # Tile size: multiple of 8 (sublane) or equal to the full batch dim.
    tb = min(tile_b, batch)
    if tb != batch and tb % 8 != 0:
        tb = max(8, (tb // 8) * 8)
    grid = (pl.cdiv(batch, tb),)

    block = lambda: pl.BlockSpec((tb, d), lambda i: (i, 0))
    in_specs = [block(), block(), block()]
    args = [pred_jts, gt_joints, gt_joints_vis]

    if norm:
        sp, sg = _global_abs_sums(pred_jts, gt_joints,
                                  batch=batch, d=d, tile_b=tb, grid=grid)
        in_specs += [pl.BlockSpec((1, 1), lambda i: (0, 0)),
                     pl.BlockSpec((1, 1), lambda i: (0, 0))]
        args += [sp, sg]

    kernel = functools.partial(_l1_joint_loss_kernel,
                               batch=batch, tile_b=tb,
                               size_average=size_average, norm=norm)

    out = pl.pallas_call(
        kernel,
        out_shape=jax.ShapeDtypeStruct((1, 1), jnp.float32),
        grid_spec=pltpu.PrefetchScalarGridSpec(
            num_scalar_prefetch=0,
            grid=grid,
            in_specs=in_specs,
            out_specs=pl.BlockSpec((1, 1), lambda i: (0, 0)),
            scratch_shapes=[pltpu.VMEM((1, 1), jnp.float32),   # running total
                            pltpu.VMEM((1, 1), jnp.float32)]), # running num_valid
        compiler_params=pltpu.CompilerParams(
            dimension_semantics=("arbitrary",)),
    )(*args)
    return out[0, 0]


# ---------------------------------------------------------------------------
# Pure-JAX reference (mirrors the PyTorch module).
# ---------------------------------------------------------------------------
def _reference_loss(preds, gt_joints, gt_joints_vis, *, num_joints,
                    size_average=True, norm=False):
    pred_jts = preds.reshape((preds.shape[0], num_joints * 3)).astype(jnp.float32)
    inp, tgt = pred_jts, gt_joints.astype(jnp.float32)
    w = gt_joints_vis.astype(jnp.float32)
    if norm:
        inp = inp / jnp.sum(jnp.abs(inp))
        tgt = tgt / jnp.sum(jnp.abs(tgt))
    out = jnp.abs(inp - tgt) * w
    if size_average:
        num_valid = jnp.sum(
            jnp.any(w.astype(jnp.int32) != 0, axis=1).astype(jnp.float32))
        return jnp.sum(out) / num_valid
    return jnp.sum(out)


if __name__ == "__main__":
    key = jax.random.PRNGKey(0)
    k1, k2, k3, k4, k5, k6 = jax.random.split(key, 6)

    # --- Case 1: module defaults (size_average=True, norm=False), small B ---
    batch, num_joints = 2, 8
    preds = jax.random.normal(k1, (batch, num_joints, 3), dtype=jnp.float32)
    gt_joints = jax.random.normal(k2, (batch, num_joints * 3), dtype=jnp.float32)
    gt_joints_vis = (jax.random.uniform(k3, (batch, num_joints * 3)) > 0.3
                     ).astype(jnp.float32)

    loss = l1_joint_regression_loss(preds, gt_joints, gt_joints_vis,
                                    num_joints=num_joints,
                                    size_average=True, norm=False)
    loss = jax.block_until_ready(loss)
    ref = _reference_loss(preds, gt_joints, gt_joints_vis,
                          num_joints=num_joints, size_average=True, norm=False)
    assert jnp.allclose(loss, ref, rtol=1e-5, atol=1e-5), (loss, ref)

    # --- Case 2: multi-tile grid with a ragged last tile, sum reduction -----
    batch2 = 20
    preds2 = jax.random.normal(k4, (batch2, num_joints, 3), dtype=jnp.float32)
    gt2 = jax.random.normal(k5, (batch2, num_joints * 3), dtype=jnp.float32)
    vis2 = (jax.random.uniform(k6, (batch2, num_joints * 3)) > 0.3
            ).astype(jnp.float32)

    loss2 = l1_joint_regression_loss(preds2, gt2, vis2,
                                     num_joints=num_joints,
                                     size_average=True, norm=False, tile_b=8)
    loss2 = jax.block_until_ready(loss2)
    ref2 = _reference_loss(preds2, gt2, vis2, num_joints=num_joints,
                           size_average=True, norm=False)
    assert jnp.allclose(loss2, ref2, rtol=1e-5, atol=1e-5), (loss2, ref2)

    loss2b = l1_joint_regression_loss(preds2, gt2, vis2,
                                      num_joints=num_joints,
                                      size_average=False, norm=False, tile_b=8)
    loss2b = jax.block_until_ready(loss2b)
    ref2b = _reference_loss(preds2, gt2, vis2, num_joints=num_joints,
                            size_average=False, norm=False)
    assert jnp.allclose(loss2b, ref2b, rtol=1e-5, atol=1e-5), (loss2b, ref2b)

    # --- Case 3: norm=True two-pass path (approx reciprocal -> looser tol) --
    loss3 = l1_joint_regression_loss(preds, gt_joints, gt_joints_vis,
                                     num_joints=num_joints,
                                     size_average=True, norm=True)
    loss3 = jax.block_until_ready(loss3)
    ref3 = _reference_loss(preds, gt_joints, gt_joints_vis,
                           num_joints=num_joints, size_average=True, norm=True)
    assert jnp.allclose(loss3, ref3, rtol=2e-2, atol=1e-6), (loss3, ref3)

    print("KERNEL_OK")
</pallas_src>

<mosaic_0001>
module attributes {stable_mosaic.version = 11 : i64} {
  func.func @_l1_joint_loss_kernel(%arg0: i32, %arg1: memref<2x24xf32, #tpu.memory_space<vmem>>, %arg2: memref<2x24xf32, #tpu.memory_space<vmem>>, %arg3: memref<2x24xf32, #tpu.memory_space<vmem>>, %arg4: memref<1x1xf32, #tpu.memory_space<vmem>>, %arg5: memref<1x1xf32, #tpu.memory_space<vmem>>, %arg6: memref<1x1xf32, #tpu.memory_space<vmem>>) attributes {dimension_semantics = [#tpu.dimension_semantics<arbitrary>], iteration_bounds = array<i64: 1>, scalar_prefetch = 0 : i64, scratch_operands = 2 : i64, tpu.core_type = #tpu.core_type<tc>, window_params = [{transform_indices = @transform_0, window_bounds = array<i64: 2, 24>}, {transform_indices = @transform_1, window_bounds = array<i64: 2, 24>}, {transform_indices = @transform_2, window_bounds = array<i64: 2, 24>}, {pipeline_mode = #tpu.pipeline_mode<synchronous>, transform_indices = @transform_3, window_bounds = array<i64: 1, 1>}]} {
    %c0_i32 = arith.constant 0 : i32
    %0 = arith.cmpi eq, %arg0, %c0_i32 : i32
    %1 = arith.extui %0 : i1 to i32
    %c0_i32_0 = arith.constant 0 : i32
    %2 = arith.cmpi ne, %1, %c0_i32_0 : i32
    scf.if %2 {
      %cst_24 = arith.constant 0.000000e+00 : f32
      %51 = vector.broadcast %cst_24 : f32 to vector<1x1xf32>
      %c0_25 = arith.constant 0 : index
      %c0_26 = arith.constant 0 : index
      %52 = vector.load %arg5[%c0_25, %c0_26] : memref<1x1xf32, #tpu.memory_space<vmem>>, vector<1x1xf32>
      tpu.vector_store %arg5[%c0_25, %c0_26], %51 {strides = array<i32>} : memref<1x1xf32, #tpu.memory_space<vmem>>, vector<1x1xf32>,
      %cst_27 = arith.constant 0.000000e+00 : f32
      %53 = vector.broadcast %cst_27 : f32 to vector<1x1xf32>
      %c0_28 = arith.constant 0 : index
      %c0_29 = arith.constant 0 : index
      %54 = vector.load %arg6[%c0_28, %c0_29] : memref<1x1xf32, #tpu.memory_space<vmem>>, vector<1x1xf32>
      tpu.vector_store %arg6[%c0_28, %c0_29], %53 {strides = array<i32>} : memref<1x1xf32, #tpu.memory_space<vmem>>, vector<1x1xf32>,
    } else {
    }
    %c0 = arith.constant 0 : index
    %c0_1 = arith.constant 0 : index
    %3 = vector.load %arg1[%c0, %c0_1] : memref<2x24xf32, #tpu.memory_space<vmem>>, vector<2x24xf32>
    %c0_2 = arith.constant 0 : index
    %c0_3 = arith.constant 0 : index
    %4 = vector.load %arg2[%c0_2, %c0_3] : memref<2x24xf32, #tpu.memory_space<vmem>>, vector<2x24xf32>
    %c0_4 = arith.constant 0 : index
    %c0_5 = arith.constant 0 : index
    %5 = vector.load %arg3[%c0_4, %c0_5] : memref<2x24xf32, #tpu.memory_space<vmem>>, vector<2x24xf32>
    %c2_i32 = arith.constant 2 : i32
    %6 = arith.muli %arg0, %c2_i32 : i32
    %7 = tpu.iota {dimensions = array<i32: 0>} : vector<2x1xi32>
    %8 = vector.broadcast %6 : i32 to vector<2x1xi32>
    %9 = arith.addi %8, %7 : vector<2x1xi32>
    %c2_i32_6 = arith.constant 2 : i32
    %10 = vector.broadcast %c2_i32_6 : i32 to vector<2x1xi32>
    %11 = arith.cmpi slt, %9, %10 : vector<2x1xi32>
    %12 = arith.subf %3, %4 : vector<2x24xf32>
    %13 = math.absf %12 : vector<2x24xf32>
    %14 = arith.mulf %13, %5 : vector<2x24xf32>
    %cst = arith.constant 0.000000e+00 : f32
    %15 = vector.shape_cast %11 : vector<2x1xi1> to vector<2x1xi1>
    %16 = vector.broadcast %15 : vector<2x1xi1> to vector<2x24xi1>
    %17 = vector.broadcast %cst : f32 to vector<2x24xf32>
    %18 = arith.select %16, %14, %17 : vector<2x24xi1>, vector<2x24xf32>
    %c0_7 = arith.constant 0 : index
    %c0_8 = arith.constant 0 : index
    %19 = vector.load %arg5[%c0_7, %c0_8] : memref<1x1xf32, #tpu.memory_space<vmem>>, vector<1x1xf32>
    %20 = vector.shape_cast %18 : vector<2x24xf32> to vector<1x2x24xf32>
    %cst_9 = arith.constant dense<0.000000e+00> : vector<1xf32>
    %21 = vector.multi_reduction <add>, %20, %cst_9 [1, 2] : vector<1x2x24xf32> to vector<1xf32>
    %22 = vector.shape_cast %21 : vector<1xf32> to vector<1x1x1xf32>
    %23 = vector.extract %22[0, 0, 0] : f32 from vector<1x1x1xf32>
    %24 = vector.broadcast %23 : f32 to vector<1x1xf32>
    %25 = arith.addf %19, %24 : vector<1x1xf32>
    %c0_10 = arith.constant 0 : index
    %c0_11 = arith.constant 0 : index
    %26 = vector.load %arg5[%c0_10, %c0_11] : memref<1x1xf32, #tpu.memory_space<vmem>>, vector<1x1xf32>
    tpu.vector_store %arg5[%c0_10, %c0_11], %25 {strides = array<i32>} : memref<1x1xf32, #tpu.memory_space<vmem>>, vector<1x1xf32>,
    %27 = math.absf %5 : vector<2x24xf32>
    %cst_12 = arith.constant 1.000000e+00 : f32
    %28 = vector.broadcast %cst_12 : f32 to vector<2x24xf32>
    %29 = arith.cmpf oge, %27, %28 : vector<2x24xf32>
    %cst_13 = arith.constant 1.000000e+00 : f32
    %cst_14 = arith.constant 0.000000e+00 : f32
    %30 = vector.broadcast %cst_13 : f32 to vector<2x24xf32>
    %31 = vector.broadcast %cst_14 : f32 to vector<2x24xf32>
    %32 = arith.select %29, %30, %31 : vector<2x24xi1>, vector<2x24xf32>
    %cst_15 = arith.constant dense<0xFF800000> : vector<2xf32>
    %33 = vector.multi_reduction <maximumf>, %32, %cst_15 [1] : vector<2x24xf32> to vector<2xf32>
    %cst_16 = arith.constant 0.000000e+00 : f32
    %34 = vector.broadcast %cst_16 : f32 to vector<2xf32>
    %35 = arith.cmpf ogt, %33, %34 : vector<2xf32>
    %36 = vector.shape_cast %35 : vector<2xi1> to vector<2x1xi1>
    %37 = arith.andi %36, %11 : vector<2x1xi1>
    %c0_17 = arith.constant 0 : index
    %c0_18 = arith.constant 0 : index
    %38 = vector.load %arg6[%c0_17, %c0_18] : memref<1x1xf32, #tpu.memory_space<vmem>>, vector<1x1xf32>
    %39 = arith.extui %37 : vector<2x1xi1> to vector<2x1xi32>
    %40 = arith.sitofp %39 : vector<2x1xi32> to vector<2x1xf32>
    %41 = vector.shape_cast %40 : vector<2x1xf32> to vector<1x2x1xf32>
    %cst_19 = arith.constant dense<0.000000e+00> : vector<1xf32>
    %42 = vector.multi_reduction <add>, %41, %cst_19 [1, 2] : vector<1x2x1xf32> to vector<1xf32>
    %43 = vector.shape_cast %42 : vector<1xf32> to vector<1x1x1xf32>
    %44 = vector.extract %43[0, 0, 0] : f32 from vector<1x1x1xf32>
    %45 = vector.broadcast %44 : f32 to vector<1x1xf32>
    %46 = arith.addf %38, %45 : vector<1x1xf32>
    %c0_20 = arith.constant 0 : index
    %c0_21 = arith.constant 0 : index
    %47 = vector.load %arg6[%c0_20, %c0_21] : memref<1x1xf32, #tpu.memory_space<vmem>>, vector<1x1xf32>
    tpu.vector_store %arg6[%c0_20, %c0_21], %46 {strides = array<i32>} : memref<1x1xf32, #tpu.memory_space<vmem>>, vector<1x1xf32>,
    %c0_i32_22 = arith.constant 0 : i32
    %48 = arith.cmpi eq, %arg0, %c0_i32_22 : i32
    %49 = arith.extui %48 : i1 to i32
    %c0_i32_23 = arith.constant 0 : i32
    %50 = arith.cmpi ne, %49, %c0_i32_23 : i32
    scf.if %50 {
      %c0_24 = arith.constant 0 : index
      %c0_25 = arith.constant 0 : index
      %51 = vector.load %arg5[%c0_24, %c0_25] : memref<1x1xf32, #tpu.memory_space<vmem>>, vector<1x1xf32>
      %c0_26 = arith.constant 0 : index
      %c0_27 = arith.constant 0 : index
      %52 = vector.load %arg6[%c0_26, %c0_27] : memref<1x1xf32, #tpu.memory_space<vmem>>, vector<1x1xf32>
      %53 = arith.divf %51, %52 : vector<1x1xf32>
      %c0_28 = arith.constant 0 : index
      %c0_29 = arith.constant 0 : index
      %54 = vector.load %arg4[%c0_28, %c0_29] : memref<1x1xf32, #tpu.memory_space<vmem>>, vector<1x1xf32>
      tpu.vector_store %arg4[%c0_28, %c0_29], %53 {strides = array<i32>} : memref<1x1xf32, #tpu.memory_space<vmem>>, vector<1x1xf32>,
    } else {
    }
    return
  }
  func.func @transform_0(%arg0: i32) -> (i32, i32) {
    %c0_i32 = arith.constant 0 : i32
    %c0_i32_0 = arith.constant 0 : i32
    return %arg0, %c0_i32 : i32, i32
  }
  func.func @transform_1(%arg0: i32) -> (i32, i32) {
    %c0_i32 = arith.constant 0 : i32
    %c0_i32_0 = arith.constant 0 : i32
    return %arg0, %c0_i32 : i32, i32
  }
  func.func @transform_2(%arg0: i32) -> (i32, i32) {
    %c0_i32 = arith.constant 0 : i32
    %c0_i32_0 = arith.constant 0 : i32
    return %arg0, %c0_i32 : i32, i32
  }
  func.func @transform_3(%arg0: i32) -> (i32, i32) {
    %c0_i32 = arith.constant 0 : i32
    %c0_i32_0 = arith.constant 0 : i32
    %c0_i32_1 = arith.constant 0 : i32
    return %c0_i32, %c0_i32_0 : i32, i32
  }
}

</mosaic_0001>

<bundles_post_ra>
// kernel: tpu_custom_call.1
= control target key start
LH: loop header
LB: loop body
LE: loop exit
PB: predicated region body
PF: predicated region fallthrough
CT: control target
= control target key end

     0   :  { %8 = vsyncpa [#allocation5], 0  ;;  %s229_s0 = inlined_call_operand.hbm [shape: f32[2,24], index: 0, kind: input, shape index: {}]   ;;  %s230_s1 = inlined_call_operand.vmem [shape: f32[2,24], index: 1, kind: input, shape index: {}]   ;;  %s231_s2 = inlined_call_operand.vmem [shape: f32[2,24], index: 2, kind: input, shape index: {}]   ;;  %s232_s3 = inlined_call_operand.hbm [shape: f32[1,1], index: 3, kind: output, shape index: {}]  }
   0x1   :  { %9 = vsyncpa [#allocation6], 0  ;;  %s171_s12 = smov [#allocation4]   ;;  %s123_s16 = scalar_lea.hbm %s229_s0, 32 }
   0x2   :  { %s16_s13 = sshll.u32 %s171_s12, 4  ;;  %p124_p0 = scmp.ne.s32.totalorder %s229_s0, %s123_s16  ;;  %s17_s13 = int_to_ptr.vmem [resolvable:$true] %s16_s13 }
   0x3   :  { %p127_p1 = scmp.lt.u32.totalorder %s123_s16, %s229_s0 }
   0x5   :  { %p129_p2 = pnand %p127_p1, %p124_p0 }
   0x7   :  { %132 = shalt.err (!%p129_p2)
}
   0x8   :  { %s133_s21 = scalar_lea.vmem %s17_s13, 32  ;;  %p138_p4 = scmp.lt.s32.totalorder %s17_s13, %s17_s13 }
   0x9   :  { %p134_p3 = scmp.ne.s32.totalorder %s17_s13, %s133_s21  ;;  %p139_p5 = scmp.lt.s32.totalorder %s133_s21, %s133_s21 }
   0xb   :  { %p140_p6 = por %p139_p5, %p138_p4 }
   0xd   :  { %p141_p7 = pnand %p140_p6, %p134_p3 }
   0xf   :  { %144 = shalt.err (!%p141_p7)
}
  0x10   :  { %19 = dma.hbm_to_vmem [thread:$0]  %s229_s0, 32, %s17_s13, [#allocation5]  }
  0x11   :  { %167 = dma.done.wait [#allocation5], 32  }
  0x12   :  { %168 = vsyncadd [#allocation5], 4294967264  ;;  %v38_v0 = vlaneseq  ;;  %v36_v2 = vld [vmem:[%s231_s2] sm:$0x3]  ;;  %v34_v3 = vld [vmem:[#allocation4] sm:$0x3] }
  0x13   :  { %v35_v4 = vld [vmem:[%s230_s1] sm:$0x3]  ;;  %v65_v5 = vand.u32 2147483647, %v36_v2  ;;  %vm50_vm0 = vcmask 189440   ;;  %v172_v8 = vmov 0.0  }
  0x14   :  { %v39_v1 = vshrl.u32 %v38_v0, 7  ;;  %v43_v6 = vsub.f32 %v34_v3, %v35_v4  ;;  %vm76_vm4 = vcmask 1024   ;;  %vm31_vm6 = vcmask 0   ;;  %s173_s2 = smov [#allocation7]  }
  0x15   :  { %vm66_vm1 = vcmp.ge.f32.partialorder %v65_v5, 1.0  ;;  %32 = vst.msk [vmem:[#allocation2] sm:$0x1] %vm31_vm6, %v172_v8  ;;  %33 = vst.msk [vmem:[#allocation3] sm:$0x1] %vm31_vm6, %v172_v8  ;;  %s104_s28 = sshll.u32 %s173_s2, 4  ;;  %s105_s28 = int_to_ptr.vmem [resolvable:$true] %s104_s28 }
  0x16   :  { %v44_v7 = vand.u32 2147483647, %v43_v6  ;;  %v67_v9 = vsel %vm66_vm1, 1.0, %v172_v8  ;;  %vm42_vm2 = vcmp.lt.s32.totalorder %v39_v1, 2  ;;  %s145_s29 = scalar_lea.vmem %s105_s28, 16  ;;  %s149_s30 = scalar_lea.vmem %s105_s28, 32 }
  0x17   :  { %v68_v10 = vsel %vm50_vm0, %v67_v9, -inf  ;;  %p146_p8 = scmp.ne.s32.totalorder %s105_s28, %s145_s29  ;;  %p150_p9 = scmp.lt.s32.totalorder %s105_s28, %s105_s28 }
  0x18   :  { %v45_v11 = vmul.f32 %v44_v7, %v36_v2  ;;  %69 = vmax.xlane.f32.xlu0 %v68_v10  ;;  %p151_p10 = scmp.lt.s32.totalorder %s149_s30, %s145_s29 }
  0x1a   :  { %v48_v12 = vsel %vm42_vm2, %v45_v11, 0.0  ;;  %p152_p11 = por %p151_p10, %p150_p9 }
  0x1b   :  { %v51_v13 = vsel %vm50_vm0, %v48_v12, 0.0 }
  0x1c   :  { %52 = vadd.xlane.f32.xlu0 %v51_v13  ;;  %v49_v24 = vld [vmem:[#allocation2] sm:$0x1]  ;;  %v73_v34 = vld [vmem:[#allocation3] sm:$0x1]  ;;  %p153_p12 = pnand %p152_p11, %p146_p8 }
  0xa5   :  { %v70_v14 = vpop.xlane.xlu0 %69 }
  0xa6   :  { %vm71_vm3 = vcmp.gt.f32.partialorder %v70_v14, 0.0 }
  0xa7   :  { %vm72_vm5 = vmand %vm71_vm3, %vm42_vm2 }
  0xa8   :  { %v113_v15 = vsel %vm72_vm5, 1.0, %v172_v8 }
  0xa9   :  { %v77_v16 = vsel %vm76_vm4, %v113_v15, 0.0  ;;  %v53_v17 = vpop.xlane.xlu0 %52 }
  0xaa   :  { %78 = vadd.xlane.f32.xlu1 %v77_v16  ;;  %v54_v18 = vrot.slane %v53_v17, 4 }
  0xac   :  { %v55_v19 = vadd.f32 %v54_v18, %v53_v17 }
  0xae   :  { %v56_v20 = vrot.slane %v55_v19, 2 }
  0xb0   :  { %v57_v21 = vadd.f32 %v56_v20, %v55_v19 }
  0xb2   :  { %v58_v22 = vrot.slane %v57_v21, 1 }
  0xb4   :  { %v59_v23 = vadd.f32 %v58_v22, %v57_v21 }
  0xb6   :  { %114 = vpush %v59_v23 }
  0xe7   :  { %s115_s0 = spop %114 }
  0xe8   :  { %v61_v25 = vstv %s115_s0 }
  0xe9   :  { %v62_v26 = vadd.f32 %v61_v25, %v49_v24 }
  0xeb   :  { %64 = vst.msk [vmem:[#allocation2] sm:$0x1] %vm31_vm6, %v62_v26 }
  0xf2   :  { %v93_v39 = vld [vmem:[#allocation2] sm:$0x1] }
 0x137   :  { %v79_v27 = vpop.xlane.xlu1 %78 }
 0x138   :  { %v80_v28 = vrot.slane %v79_v27, 4 }
 0x13a   :  { %v81_v29 = vadd.f32 %v80_v28, %v79_v27 }
 0x13c   :  { %v82_v30 = vrot.slane %v81_v29, 2 }
 0x13e   :  { %v83_v31 = vadd.f32 %v82_v30, %v81_v29 }
 0x140   :  { %v84_v32 = vrot.slane %v83_v31, 1 }
 0x142   :  { %v85_v33 = vadd.f32 %v84_v32, %v83_v31 }
 0x144   :  { %116 = vpush %v85_v33 }
 0x175   :  { %s117_s1 = spop %116 }
 0x176   :  { %v87_v35 = vstv %s117_s1 }
 0x177   :  { %v88_v36 = vadd.f32 %v87_v35, %v73_v34 }
 0x179   :  { %89 = vst.msk [vmem:[#allocation3] sm:$0x1] %vm31_vm6, %v88_v36 }
 0x180   :  { %v94_v37 = vld [vmem:[#allocation3] sm:$0x1] }
 0x181   :  { %121 = vrcp.f32 %v94_v37 }
 0x18b   :  { %v122_v38 = vpop.eup %121 }
 0x18c   :  { %v96_v40 = vmul.f32 %v122_v38, %v93_v39 }
 0x18e   :  { %97 = vst.msk [vmem:[#allocation7] sm:$0x1] %vm31_vm6, %v96_v40 }
 0x18f   :  { %156 = shalt.err (!%p153_p12)
}
 0x190   :  { %s157_s6 = scalar_lea.hbm %s232_s3, 16 }
 0x191   :  { %p158_p13 = scmp.ne.s32.totalorder %s232_s3, %s157_s6  ;;  %p161_p0 = scmp.lt.u32.totalorder %s157_s6, %s232_s3 }
 0x193   :  { %p163_p1 = pnand %p161_p0, %p158_p13 }
 0x195   :  { %166 = shalt.err (!%p163_p1)
}
 0x196   :  { %107 = dma.vmem_to_hbm [thread:$0]  %s105_s28, 16, %s232_s3, [#allocation6]  }
 0x197   :  { %169 = dma.done.wait [#allocation6], 16  }
 0x198   :  { %170 = vsyncadd [#allocation6], 4294967280 }
 0x199   :  { %111 = vsyncpa [#allocation5], 1 }
 0x19a   :  { %112 = vsyncpa [#allocation6], 1 }

</bundles_post_ra>
